<compile_context>
chip_gen: v5e
topology: v5e:2x2
jax: 0.10.0
libtpu: 0.0.40
codegen_flags: <defaults>
</compile_context>

<pallas_src>
import functools

import jax
import jax.numpy as jnp
from jax.experimental import pallas as pl
from jax.experimental.pallas import tpu as pltpu


def _procrustes_stats_kernel(packed_ref, out_ref, *, weight_threshold: float, eps: float):
    # packed_ref block: (TB, 8, N). Rows 0-2 = src xyz, 3-5 = tgt xyz, 6 = w, 7 = pad.
    src = packed_ref[:, 0:3, :]                                   # (TB, 3, N)
    tgt = packed_ref[:, 3:6, :]                                   # (TB, 3, N)
    w = packed_ref[:, 6:7, :]                                     # (TB, 1, N)

    # Threshold; keep weights UNnormalized and fold 1/W in at the end
    # (removes an N-length divide and the serialization on sum(w)).
    w = jnp.where(w < weight_threshold, jnp.zeros_like(w), w)     # (TB, 1, N)
    w_sum = jnp.sum(w, axis=-1, keepdims=True) + eps              # (TB, 1, 1)
    inv_w = pl.reciprocal(w_sum)                                  # exact 1/W (tiny)

    # Weighted centroids.
    src_c = jnp.sum(src * w, axis=-1, keepdims=True) * inv_w      # (TB, 3, 1)
    tgt_c = jnp.sum(tgt * w, axis=-1, keepdims=True) * inv_w      # (TB, 3, 1)

    # Centered points (centered form is numerically safer than the fused
    # H = sum(w s t^T) - W sc tc^T formulation).
    src_cen = src - src_c                                         # (TB, 3, N)
    tgt_cen = tgt - tgt_c                                         # (TB, 3, N)
    sw = src_cen * w                                              # (TB, 3, N)

    # H[b,i,j] = (1/W) * sum_n w[b,n] * src_cen[b,i,n] * tgt_cen[b,j,n]
    # 3x3 output -> VPU multiplies + lane reductions; an MXU call would only
    # add push/drain latency for <0.1% utilization.
    cols = []
    for j in range(3):
        t_j = tgt_cen[:, j:j + 1, :]                              # (TB, 1, N)
        cols.append(jnp.sum(sw * t_j, axis=-1, keepdims=True))    # (TB, 3, 1)
    h = jnp.concatenate(cols, axis=-1) * inv_w                    # (TB, 3, 3)

    # Single consolidated store: [H | src_c | tgt_c | pad] -> (TB, 3, 8).
    pad = jnp.zeros_like(h)
    out_ref[...] = jnp.concatenate([h, src_c, tgt_c, pad], axis=-1)


def _choose_block_batch(B: int, N: int) -> int:
    """Batches per grid step: ~4 MiB blocks, >=2 grid steps, <=64 per step."""
    bytes_per_batch = 8 * N * 4                                   # one (8, N) f32 slab
    tb = max(1, (4 * 1024 * 1024) // bytes_per_batch)
    tb = min(tb, 64)
    if B >= 2:
        tb = min(tb, -(-B // 2))   # keep >= 2 grid steps so both v7x TCs get work
    return max(1, min(tb, B))


def _procrustes_stats(packed, weight_threshold, eps, tb):
    """packed: (B_pad, 8, N) f32, B_pad % tb == 0. Returns (B_pad, 3, 8) stats."""
    B, _, N = packed.shape
    kernel = functools.partial(
        _procrustes_stats_kernel, weight_threshold=weight_threshold, eps=eps)
    # TODO(synk): for very large N add an "arbitrary" reduction axis over N with
    # a VMEM accumulator so blocks stay bounded under v7x's 64 MiB VMEM.
    return pl.pallas_call(
        kernel,
        out_shape=jax.ShapeDtypeStruct((B, 3, 8), jnp.float32),
        grid=(B // tb,),
        in_specs=[pl.BlockSpec((tb, 8, N), lambda b: (b, 0, 0))],
        out_specs=pl.BlockSpec((tb, 3, 8), lambda b: (b, 0, 0)),
        compiler_params=pltpu.CompilerParams(
            dimension_semantics=("parallel",),
            vmem_limit_bytes=48 * 1024 * 1024),
    )(packed)


def weighted_procrustes(src_points, tgt_points, weights=None, *,
                        weight_threshold: float = 0.0, eps: float = 1e-5):
    """src_points, tgt_points: (B, N, 3) or (N, 3); weights: (B, N) or (N,) or None.

    Returns transform: (B, 4, 4) or (4, 4).
    """
    squeeze_first = src_points.ndim == 2
    if squeeze_first:
        src_points = src_points[None]
        tgt_points = tgt_points[None]
        if weights is not None:
            weights = weights[None]

    B, N, _ = src_points.shape
    if weights is None:
        weights = jnp.ones((B, N), dtype=jnp.float32)

    # Single packed (B, 8, N) kernel operand; the transposes + concat fuse into
    # one XLA copy (no standalone (B,N,3)->(B,3,N) HBM round trip).
    # TODO(synk): if upstream data is bf16, ship bf16 over HBM and upcast in VMEM (v5e BW).
    packed = jnp.concatenate([
        jnp.transpose(src_points.astype(jnp.float32), (0, 2, 1)),   # rows 0-2
        jnp.transpose(tgt_points.astype(jnp.float32), (0, 2, 1)),   # rows 3-5
        weights.astype(jnp.float32)[:, None, :],                    # row 6
        jnp.zeros((B, 1, N), jnp.float32),                          # row 7 pad
    ], axis=1)

    tb = _choose_block_batch(B, N)
    b_pad = -(-B // tb) * tb
    if b_pad != B:
        packed = jnp.pad(packed, ((0, b_pad - B), (0, 0), (0, 0)))

    stats = _procrustes_stats(packed, weight_threshold, eps, tb)[:B]   # (B, 3, 8)
    H = stats[:, :, 0:3]                                               # (B, 3, 3)
    src_c = stats[:, :, 3:4]                                           # (B, 3, 1)
    tgt_c = stats[:, :, 4:5]                                           # (B, 3, 1)

    # TODO(synk): 3x3 SVD / det / sign-correction have no Pallas TPU primitive;
    # done here in plain JAX on tiny (B,3,3) matrices.
    U, _, Vh = jnp.linalg.svd(H)                 # H = U S Vh
    V = jnp.swapaxes(Vh, -1, -2)
    Ut = jnp.swapaxes(U, -1, -2)
    sign = jnp.sign(jnp.linalg.det(V @ Ut))      # sign(det)==0 when det==0 (matches ref)
    eye = jnp.tile(jnp.eye(3, dtype=jnp.float32)[None], (B, 1, 1))
    eye = eye.at[:, 2, 2].set(sign)
    R = V @ eye @ Ut                             # (B, 3, 3)

    t = (tgt_c - R @ src_c)[..., 0]              # (B, 3)

    transform = jnp.tile(jnp.eye(4, dtype=jnp.float32)[None], (B, 1, 1))
    transform = transform.at[:, :3, :3].set(R)
    transform = transform.at[:, :3, 3].set(t)

    if squeeze_first:
        transform = transform[0]
    return transform


class WeightedProcrustes:
    """Mirror of the PyTorch module (no learnable parameters)."""

    def __init__(self, weight_threshold: float = 0.0, eps: float = 1e-5):
        self.weight_threshold = weight_threshold
        self.eps = eps

    def __call__(self, src_points, tgt_points, weights=None):
        return weighted_procrustes(
            src_points, tgt_points, weights,
            weight_threshold=self.weight_threshold, eps=self.eps)


def _reference(src, tgt, w, weight_threshold, eps):
    """Pure-JAX reference of the full forward (for a sanity check)."""
    B = src.shape[0]
    w = jnp.where(w < weight_threshold, jnp.zeros_like(w), w)
    w = w / (jnp.sum(w, axis=1, keepdims=True) + eps)
    w3 = w[:, :, None]
    sc = jnp.sum(src * w3, axis=1, keepdims=True)
    tc = jnp.sum(tgt * w3, axis=1, keepdims=True)
    s_cen = src - sc
    t_cen = tgt - tc
    H = jnp.swapaxes(s_cen, 1, 2) @ (w3 * t_cen)
    U, _, Vh = jnp.linalg.svd(H)
    V = jnp.swapaxes(Vh, 1, 2)
    Ut = jnp.swapaxes(U, 1, 2)
    sign = jnp.sign(jnp.linalg.det(V @ Ut))
    eye = jnp.tile(jnp.eye(3, dtype=jnp.float32)[None], (B, 1, 1)).at[:, 2, 2].set(sign)
    R = V @ eye @ Ut
    t = (jnp.swapaxes(tc, 1, 2) - R @ jnp.swapaxes(sc, 1, 2))[..., 0]
    T = jnp.tile(jnp.eye(4, dtype=jnp.float32)[None], (B, 1, 1))
    return T.at[:, :3, :3].set(R).at[:, :3, 3].set(t)


if __name__ == "__main__":
    key = jax.random.PRNGKey(0)

    module = WeightedProcrustes(weight_threshold=0.0, eps=1e-5)

    # Case 1: small batch (TB == 1 path, 2 grid steps).
    k1, k2, k3 = jax.random.split(key, 3)
    B, N = 2, 128
    src = jax.random.normal(k1, (B, N, 3), dtype=jnp.float32)
    tgt = jax.random.normal(k2, (B, N, 3), dtype=jnp.float32)
    weights = jax.random.uniform(k3, (B, N), dtype=jnp.float32)
    transform = jax.block_until_ready(module(src, tgt, weights))
    ref = jax.block_until_ready(_reference(src, tgt, weights, 0.0, 1e-5))
    assert transform.shape == (B, 4, 4)
    assert jnp.allclose(transform, ref, atol=2e-3, rtol=1e-3), "mismatch vs reference (B=2)"

    # Case 2: larger batch (exercises TB > 1 blocked path).
    k4, k5, k6 = jax.random.split(jax.random.PRNGKey(1), 3)
    B2, N2 = 8, 256
    src2 = jax.random.normal(k4, (B2, N2, 3), dtype=jnp.float32)
    tgt2 = jax.random.normal(k5, (B2, N2, 3), dtype=jnp.float32)
    weights2 = jax.random.uniform(k6, (B2, N2), dtype=jnp.float32)
    transform2 = jax.block_until_ready(module(src2, tgt2, weights2))
    ref2 = jax.block_until_ready(_reference(src2, tgt2, weights2, 0.0, 1e-5))
    assert transform2.shape == (B2, 4, 4)
    assert jnp.allclose(transform2, ref2, atol=2e-3, rtol=1e-3), "mismatch vs reference (B=8)"

    print("KERNEL_OK")
</pallas_src>

<mosaic_0001>
module attributes {stable_mosaic.version = 11 : i64} {
  func.func @_procrustes_stats_kernel(%arg0: i32, %arg1: memref<1x8x128xf32, #tpu.memory_space<vmem>>, %arg2: memref<1x3x8xf32, #tpu.memory_space<vmem>>) attributes {dimension_semantics = [#tpu.dimension_semantics<parallel>], iteration_bounds = array<i64: 2>, scalar_prefetch = 0 : i64, scratch_operands = 0 : i64, tpu.core_type = #tpu.core_type<tc>, window_params = [{transform_indices = @transform_0, window_bounds = array<i64: 1, 8, 128>}, {transform_indices = @transform_1, window_bounds = array<i64: 1, 3, 8>}]} {
    %c0 = arith.constant 0 : index
    %c0_0 = arith.constant 0 : index
    %c0_1 = arith.constant 0 : index
    %0 = vector.load %arg1[%c0, %c0_0, %c0_1] : memref<1x8x128xf32, #tpu.memory_space<vmem>>, vector<1x3x128xf32>
    %c0_2 = arith.constant 0 : index
    %c3 = arith.constant 3 : index
    %c0_3 = arith.constant 0 : index
    %1 = vector.load %arg1[%c0_2, %c3, %c0_3] : memref<1x8x128xf32, #tpu.memory_space<vmem>>, vector<1x3x128xf32>
    %c0_4 = arith.constant 0 : index
    %c6 = arith.constant 6 : index
    %c0_5 = arith.constant 0 : index
    %2 = vector.load %arg1[%c0_4, %c6, %c0_5] : memref<1x8x128xf32, #tpu.memory_space<vmem>>, vector<1x1x128xf32>
    %cst = arith.constant 0.000000e+00 : f32
    %3 = vector.broadcast %cst : f32 to vector<1x1x128xf32>
    %4 = arith.cmpf olt, %2, %3 : vector<1x1x128xf32>
    %cst_6 = arith.constant 0.000000e+00 : f32
    %5 = vector.broadcast %cst_6 : f32 to vector<1x1x128xf32>
    %6 = arith.select %4, %5, %2 : vector<1x1x128xi1>, vector<1x1x128xf32>
    %cst_7 = arith.constant dense<0.000000e+00> : vector<1x1xf32>
    %7 = vector.multi_reduction <add>, %6, %cst_7 [2] : vector<1x1x128xf32> to vector<1x1xf32>
    %8 = vector.shape_cast %7 : vector<1x1xf32> to vector<1x1x1xf32>
    %cst_8 = arith.constant 9.99999974E-6 : f32
    %9 = vector.broadcast %cst_8 : f32 to vector<1x1x1xf32>
    %10 = arith.addf %8, %9 : vector<1x1x1xf32>
    %11 = tpu.reciprocal %10 : vector<1x1x1xf32> -> vector<1x1x1xf32>
    %12 = vector.broadcast %6 : vector<1x1x128xf32> to vector<1x3x128xf32>
    %13 = arith.mulf %0, %12 : vector<1x3x128xf32>
    %cst_9 = arith.constant dense<0.000000e+00> : vector<1x3xf32>
    %14 = vector.multi_reduction <add>, %13, %cst_9 [2] : vector<1x3x128xf32> to vector<1x3xf32>
    %15 = vector.shape_cast %14 : vector<1x3xf32> to vector<1x3x1xf32>
    %16 = vector.broadcast %11 : vector<1x1x1xf32> to vector<1x3x1xf32>
    %17 = arith.mulf %15, %16 : vector<1x3x1xf32>
    %18 = vector.broadcast %6 : vector<1x1x128xf32> to vector<1x3x128xf32>
    %19 = arith.mulf %1, %18 : vector<1x3x128xf32>
    %cst_10 = arith.constant dense<0.000000e+00> : vector<1x3xf32>
    %20 = vector.multi_reduction <add>, %19, %cst_10 [2] : vector<1x3x128xf32> to vector<1x3xf32>
    %21 = vector.shape_cast %20 : vector<1x3xf32> to vector<1x3x1xf32>
    %22 = vector.broadcast %11 : vector<1x1x1xf32> to vector<1x3x1xf32>
    %23 = arith.mulf %21, %22 : vector<1x3x1xf32>
    %24 = vector.broadcast %17 : vector<1x3x1xf32> to vector<1x3x128xf32>
    %25 = arith.subf %0, %24 : vector<1x3x128xf32>
    %26 = vector.broadcast %23 : vector<1x3x1xf32> to vector<1x3x128xf32>
    %27 = arith.subf %1, %26 : vector<1x3x128xf32>
    %28 = vector.broadcast %6 : vector<1x1x128xf32> to vector<1x3x128xf32>
    %29 = arith.mulf %25, %28 : vector<1x3x128xf32>
    %30 = vector.extract_strided_slice %27 {offsets = [0, 0, 0], sizes = [1, 1, 128], strides = [1, 1, 1]} : vector<1x3x128xf32> to vector<1x1x128xf32>
    %31 = vector.broadcast %30 : vector<1x1x128xf32> to vector<1x3x128xf32>
    %32 = arith.mulf %29, %31 : vector<1x3x128xf32>
    %cst_11 = arith.constant dense<0.000000e+00> : vector<1x3xf32>
    %33 = vector.multi_reduction <add>, %32, %cst_11 [2] : vector<1x3x128xf32> to vector<1x3xf32>
    %34 = vector.shape_cast %33 : vector<1x3xf32> to vector<1x3x1xf32>
    %35 = vector.extract_strided_slice %27 {offsets = [0, 1, 0], sizes = [1, 1, 128], strides = [1, 1, 1]} : vector<1x3x128xf32> to vector<1x1x128xf32>
    %36 = vector.broadcast %35 : vector<1x1x128xf32> to vector<1x3x128xf32>
    %37 = arith.mulf %29, %36 : vector<1x3x128xf32>
    %cst_12 = arith.constant dense<0.000000e+00> : vector<1x3xf32>
    %38 = vector.multi_reduction <add>, %37, %cst_12 [2] : vector<1x3x128xf32> to vector<1x3xf32>
    %39 = vector.shape_cast %38 : vector<1x3xf32> to vector<1x3x1xf32>
    %40 = vector.extract_strided_slice %27 {offsets = [0, 2, 0], sizes = [1, 1, 128], strides = [1, 1, 1]} : vector<1x3x128xf32> to vector<1x1x128xf32>
    %41 = vector.broadcast %40 : vector<1x1x128xf32> to vector<1x3x128xf32>
    %42 = arith.mulf %29, %41 : vector<1x3x128xf32>
    %cst_13 = arith.constant dense<0.000000e+00> : vector<1x3xf32>
    %43 = vector.multi_reduction <add>, %42, %cst_13 [2] : vector<1x3x128xf32> to vector<1x3xf32>
    %44 = vector.shape_cast %43 : vector<1x3xf32> to vector<1x3x1xf32>
    %45 = tpu.concatenate %34, %39, %44 in 2 : vector<1x3x1xf32>, vector<1x3x1xf32>, vector<1x3x1xf32> -> vector<1x3x3xf32>
    %46 = vector.broadcast %11 : vector<1x1x1xf32> to vector<1x3x3xf32>
    %47 = arith.mulf %45, %46 : vector<1x3x3xf32>
    %cst_14 = arith.constant 0.000000e+00 : f32
    %48 = vector.broadcast %cst_14 : f32 to vector<1x3x3xf32>
    %49 = tpu.concatenate %47, %17, %23, %48 in 2 : vector<1x3x3xf32>, vector<1x3x1xf32>, vector<1x3x1xf32>, vector<1x3x3xf32> -> vector<1x3x8xf32>
    %c0_15 = arith.constant 0 : index
    %c0_16 = arith.constant 0 : index
    %c0_17 = arith.constant 0 : index
    %50 = vector.load %arg2[%c0_15, %c0_16, %c0_17] : memref<1x3x8xf32, #tpu.memory_space<vmem>>, vector<1x3x8xf32>
    tpu.vector_store %arg2[%c0_15, %c0_16, %c0_17], %49 {strides = array<i32>} : memref<1x3x8xf32, #tpu.memory_space<vmem>>, vector<1x3x8xf32>,
    return
  }
  func.func @transform_0(%arg0: i32) -> (i32, i32, i32) {
    %c0_i32 = arith.constant 0 : i32
    %c0_i32_0 = arith.constant 0 : i32
    %c0_i32_1 = arith.constant 0 : i32
    return %arg0, %c0_i32, %c0_i32_0 : i32, i32, i32
  }
  func.func @transform_1(%arg0: i32) -> (i32, i32, i32) {
    %c0_i32 = arith.constant 0 : i32
    %c0_i32_0 = arith.constant 0 : i32
    %c0_i32_1 = arith.constant 0 : i32
    return %arg0, %c0_i32, %c0_i32_0 : i32, i32, i32
  }
}

</mosaic_0001>

<bundles_post_ra>
// kernel: tpu_custom_call.1
= control target key start
LH: loop header
LB: loop body
LE: loop exit
PB: predicated region body
PF: predicated region fallthrough
CT: control target
= control target key end

     0   :  { %6 = vsyncpa [#allocation3], 0  ;;  %s493_s0 = inlined_call_operand.hbm [shape: f32[2,8,128], index: 0, kind: input, shape index: {}]   ;;  %s494_s1 = inlined_call_operand.vmem [shape: f32[2,3,8], index: 1, kind: output, shape index: {}]  }
   0x1   :  { %8 = vsyncpa [#allocation3 + $0x1], 0  ;;  %s394_s6 = smov 0   ;;  %s396_s7 = smov 0  }
   0x2   :  { %s398_s8 = smov 0   ;;  %s400_s9 = smov 0  }
   0x3 LB: > { %s413_s10 = sadd.s32 4294967295, %s382_s9   ;;  %s416_s11 = sadd.s32 1, %s382_s9   ;;  %s382_s9 = sphi %s400_s9, %s501_s9   ;;  %s378_s8 = sphi %s398_s8, %s500_s8   ;;  %s374_s7 = sphi %s396_s7, %s499_s7   ;;  %s370_s6 = sphi %s394_s6, %s498_s6  }
   0x4   : > { %s18_s12 = ssub.s32 %s382_s9, %s416_s11  ;;  %s21_s13 = sadd.s32 1, %s378_s8 }
   0x5   : > { %p19_p0 = scmp.eq.s32.totalorder %s18_s12, 0  ;;  %p28_p1 = scmp.ne.s32.totalorder %s378_s8, %s374_s7 }
   0x6   : > { %p29_p2 = scmp.eq.s32.totalorder %s382_s9, 0  ;;  %p34_p3 = scmp.ne.s32.totalorder %s374_s7, %s370_s6 }
   0x7   : > { %s426_s14 = scalar_select %p19_p0, %s378_s8, %s21_s13  }
   0x8   : > { %p428_p4 = por %p29_p2, %p28_p1  ;;  %p35_p5 = scmp.eq.s32.totalorder %s413_s10, 0 }
   0x9   : > { %p283_p6 = scmp.lt.s32.totalorder %s382_s9, 2  ;;  %s84_s17 = sand.u32 1, %s378_s8  }
   0xa   : > { %p434_p7 = por %p35_p5, %p34_p3  ;;  %s270_s18 = sshll.u32 %s84_s17, 3 }
   0xb   : > { %s271_s19 = sshll.u32 %s382_s9, 3  ;;  %s88_s23 = scalar_lea.vmem [#allocation2], %s270_s18 }
   0xc   : > { %s92_s22 = scalar_lea.hbm %s493_s0, %s271_s19  ;;  %s96_s24 = sshll.u32 %s88_s23, 4  ;;  %s97_s24 = int_to_ptr.vmem [resolvable:$true] %s96_s24 }
   0xd   : > { %s94_s25 = sshll.u32 %s92_s22, 4  ;;  %p445_p8 = pnand %p283_p6, %p428_p4  ;;  %s95_s25 = int_to_ptr.hbm [resolvable:$true] %s94_s25 }
   0xe   : > { %p272_p9 = scmp.ge.s32.totalorder %s382_s9, 1  ;;  %p101_p10 = scmp.lt.s32.totalorder %s382_s9, 3 }
   0xf   : > { %s85_s27 = scalar_lea.sflag [#allocation3], %s84_s17  ;;  %s318_s28 = sshra.s32 %s95_s25, 4  ;;  %s319_s28 = int_to_ptr.hbm [resolvable:$true] %s318_s28 }
  0x10   : > { %s320_s29 = scalar_lea.hbm %s319_s28, 8  ;;  %p322_p12 = pneg %p445_p8 }
  0x11   : > { %p321_p11 = scmp.ne.s32.totalorder %s319_s28, %s320_s29  ;;  %s325_s3 = scalar_lea.hbm %s493_s0, 16 }
  0x12   : > { %p326_p1 = scmp.lt.s32.totalorder %s319_s28, %s493_s0  ;;  %p327_p2 = scmp.lt.s32.totalorder %s325_s3, %s320_s29 }
  0x13   : > { %p323_p13 = pnand %p322_p12, %p321_p11 }
  0x14   : > { %p328_p3 = por %p327_p2, %p326_p1 }
  0x15   : > { %p324_p0 = pneg %p323_p13 }
  0x17   : > { %p329_p4 = pnand %p328_p3, %p324_p0 }
  0x19   : > { %332 = shalt.err (!%p329_p4)
}
  0x1a   : > { %282 = dma.hbm_to_vmem [thread:$0]  (!%p445_p8), %s95_s25, 128, %s97_s24, %s85_s27  }
  0x1b   : > { %p102_p5 = pnand %p272_p9, %p101_p10 }
  0x1c   : > { %s107_s6 = sand.u32 (!%p102_p5), 1, %s374_s7  }
  0x1d   : > { %105 = sbr.rel (%p102_p5) target bundleno = 316 (0x13c), region = 24  ;;  %s273_s12 = sshll.u32 (!%p102_p5), %s107_s6, 3 }
  0x1e   : > { %s108_s13 = scalar_lea.sflag (!%p102_p5), [#allocation3], %s107_s6  ;;  %s111_s15 = scalar_lea.vmem (!%p102_p5), [#allocation2], %s273_s12 }
  0x22   : > { %365 = dma.done.wait (%p434_p7), %s108_s13, 128  }
  0x23   : > { %367 = vsyncadd (%p434_p7), %s108_s13, 4294967168  ;;  %v136_v0 = vld [vmem:[%s111_s15 + $0x6] sm:$0x1]  ;;  %vm139_vm0 = vcmask 1040384   ;;  %v135_v2 = vld [vmem:[%s111_s15 + $0x3] sm:$0x7] }
  0x24   : > { %vm137_vm1 = vcmp.lt.f32.partialorder %v136_v0, 0.0  ;;  %v134_v3 = vld [vmem:[%s111_s15] sm:$0x7]  ;;  %vm160_vm2 = vcmask 1042432   ;;  %p130_p6 = scmp.lt.s32.totalorder %s413_s10, 1  ;;  %vm189_vm7 = vcmask 7168  }
  0x25   : > { %v138_v1 = vsel %vm137_vm1, 0.0, %v136_v0  ;;  %vm191_vm8 = vcmask 15360   ;;  %vm194_vm9 = vcmask 23552   ;;  %vm196_vm10 = vcmask 31744  }
  0x26   : > { %v140_v4 = vsel %vm139_vm0, %v138_v1, 0.0  ;;  %v158_v5 = vperm.slane %v138_v1, 0  ;;  %s503_s10 = smov (!%p130_p6, %s413_s10), 1  ;;  %vm198_vm11 = vcmask 39936   ;;  %vm200_vm12 = vcmask 59392  }
  0x27   : > { %141 = vadd.xlane.f32.xlu0 %v140_v4  ;;  %s274_s9 = sshll.u32 %s503_s10, 2 }
  0x28   : > { %v166_v6 = vmul.f32 %v158_v5, %v135_v2  ;;  %v159_v7 = vmul.f32 %v158_v5, %v134_v3  ;;  %s133_s18 = scalar_lea.vmem %s494_s1, %s274_s9 }
  0x2a   : > { %v167_v8 = vsel %vm160_vm2, %v166_v6, 0.0  ;;  %v161_v9 = vsel %vm160_vm2, %v159_v7, 0.0 }
  0x2b   : > { %168 = vadd.xlane.f32.xlu1 %v167_v8 }
  0x2f   : > { %162 = vadd.xlane.f32.xlu0 %v161_v9 }
  0x9a   : > { %v142_v10 = vpop.xlane.xlu0 %141 }
  0x9b   : > { %v143_v11 = vadd.f32 1e-05, %v142_v10 }
  0x9d   : > { %316 = vrcp.f32 %v143_v11  ;;  %v155_v15 = vand.u32 2147483648, %v143_v11  ;;  %v153_v17 = vand.u32 2147483647, %v143_v11  ;;  %vm149_vm4 = vweird.f32 %v143_v11 }
  0x9e   : > { %v169_v22 = vpop.xlane.xlu1 %168 }
  0x9f   : > { %v156_v19 = vor.u32 1.1754944e-38, %v155_v15  ;;  %vm154_vm6 = vcmp.eq.f32.partialorder %v153_v17, 8.507059e+37 }
  0xa2   : > { %v163_v23 = vpop.xlane.xlu0 %162 }
  0xa3   : > { %v317_v12 = vpop.eup %316 }
  0xa4   : > { %v145_v13 = vmul.f32 %v317_v12, %v143_v11  ;;  %vm150_vm3 = vweird.f32 %v317_v12 }
  0xa5   : > { %vm151_vm5 = vmor %vm149_vm4, %vm150_vm3 }
  0xa6   : > { %v146_v14 = vsub.f32 1.0, %v145_v13 }
  0xa8   : > { %v147_v16 = vmul.f32 %v317_v12, %v146_v14 }
  0xaa   : > { %v148_v18 = vadd.f32 %v317_v12, %v147_v16 }
  0xac   : > { %v152_v20 = vsel %vm151_vm5, %v317_v12, %v148_v18 }
  0xad   : > { %v157_v21 = vsel %vm154_vm6, %v156_v19, %v152_v20 }
  0xae   : > { %v164_v24 = vperm.slane %v157_v21, 0 }
  0xb0   : > { %v170_v25 = vmul.f32 %v169_v22, %v164_v24  ;;  %v165_v26 = vmul.f32 %v164_v24, %v163_v23 }
  0xb2   : > { %v172_v27 = vsub.f32 %v135_v2, %v170_v25  ;;  %v171_v28 = vsub.f32 %v134_v3, %v165_v26 }
  0xb4   : > { %v173_v29 = vmul.f32 %v171_v28, %v158_v5  ;;  %v179_v30 = vperm.slane %v172_v27, 1  ;;  %v174_v31 = vperm.slane %v172_v27, 0  ;;  %v184_v36 = vperm.slane %v172_v27, 2 }
  0xb6   : > { %v180_v32 = vmul.f32 %v179_v30, %v173_v29  ;;  %v175_v33 = vmul.f32 %v174_v31, %v173_v29  ;;  %v185_v37 = vmul.f32 %v184_v36, %v173_v29 }
  0xb8   : > { %v181_v34 = vsel %vm160_vm2, %v180_v32, 0.0  ;;  %v176_v35 = vsel %vm160_vm2, %v175_v33, 0.0  ;;  %v186_v38 = vsel %vm160_vm2, %v185_v37, 0.0 }
  0xb9   : > { %182 = vadd.xlane.f32.xlu2 %v181_v34  ;;  %177 = vadd.xlane.f32.xlu1 %v176_v35 }
  0xc1   : > { %187 = vadd.xlane.f32.xlu2 %v186_v38 }
 0x12c   : > { %v183_v39 = vpop.xlane.xlu2 %182  ;;  %v178_v40 = vpop.xlane.xlu1 %177 }
 0x12d   : > { %v190_v41 = vsel %vm189_vm7, %v178_v40, %v183_v39 }
 0x134   : > { %v188_v42 = vpop.xlane.xlu2 %187 }
 0x135   : > { %v192_v43 = vsel %vm191_vm8, %v190_v41, %v188_v42 }
 0x136   : > { %v193_v44 = vmul.f32 %v192_v43, %v164_v24 }
 0x138   : > { %v195_v45 = vsel %vm194_vm9, %v193_v44, %v165_v26 }
 0x139   : > { %v197_v46 = vsel %vm196_vm10, %v195_v45, %v170_v25 }
 0x13a   : > { %v199_v47 = vsel %vm198_vm11, %v197_v46, 0.0 }
 0x13b   : > { %201 = vst.msk [vmem:[%s133_s18] sm:$0x7] %vm200_vm12, %v199_v47 }
 0x13c PF: > { %p11_p7 = scmp.ge.s32.totalorder %s416_s11, 4   ;;  %s498_s6 = smov %s374_s7 }
 0x13d   : > { %s499_s7 = smov %s378_s8  ;;  %s500_s8 = smov %s426_s14 }
 0x13e   : > { %s501_s9 = smov %s416_s11  ;;  %13 = sbr.rel (!%p11_p7) target bundleno = 3 (0x3), region = 64 }
 0x143   :  { %221 = vsyncpa [#allocation3], 1 }
 0x144   :  { %223 = vsyncpa [#allocation3 + $0x1], 1 }

</bundles_post_ra>
